<compile_context>
chip_gen: v7x
topology: tpu7x:2x2x1
jax: 0.10.0
libtpu: 0.0.40
codegen_flags: <defaults>
</compile_context>

<pallas_src>
import functools

import jax
import jax.numpy as jnp
from jax.experimental import pallas as pl
from jax.experimental.pallas import tpu as pltpu

_LANE = 128
_NEG_BIG = -1e30   # finite "-inf" stand-in: exp() underflows to 0, no NaN risk.


def _nll_kernel(x_ref, t_ref, out_ref, m_acc, l_acc, st_acc, stx_acc, *,
                hw, tile_cols, apply_softmax, mask_cols):
    j = pl.program_id(1)
    nj = pl.num_programs(1)

    # ---- init per-row accumulators at the start of every row block --------
    @pl.when(j == 0)
    def _init():
        m_acc[...] = jnp.full_like(m_acc, _NEG_BIG)
        l_acc[...] = jnp.zeros_like(l_acc)
        st_acc[...] = jnp.zeros_like(st_acc)
        stx_acc[...] = jnp.zeros_like(stx_acc)

    def _accumulate(masked):
        x = x_ref[...].astype(jnp.float32)
        t = t_ref[...].astype(jnp.float32)
        if masked:   # only the ragged last column block pays for this
            col = j * tile_cols + jax.lax.broadcasted_iota(jnp.int32, x.shape, 1)
            valid = col < hw
            x = jnp.where(valid, x, _NEG_BIG if apply_softmax else 1.0)
            t = jnp.where(valid, t, 0.0)
        if apply_softmax:
            # Online logsumexp over the spatial axis, per (b, c) row.
            bm = jnp.max(x, axis=-1, keepdims=True)
            m_new = jnp.maximum(m_acc[...], bm)
            l_acc[...] = (l_acc[...] * jnp.exp(m_acc[...] - m_new)
                          + jnp.sum(jnp.exp(x - m_new), axis=-1, keepdims=True))
            m_acc[...] = m_new
            st_acc[...] += jnp.sum(t, axis=-1, keepdims=True)
            stx_acc[...] += jnp.sum(t * x, axis=-1, keepdims=True)
        else:
            # nll = -t * log(x); a single running sum suffices.
            stx_acc[...] += jnp.sum(t * jnp.log(x), axis=-1, keepdims=True)

    if mask_cols:
        @pl.when(j == nj - 1)
        def _tail():
            _accumulate(masked=True)

        @pl.when(j != nj - 1)
        def _body():
            _accumulate(masked=False)
    else:
        _accumulate(masked=False)

    @pl.when(j == nj - 1)
    def _finalize():
        if apply_softmax:
            # sum(-t * (x - lse)) = lse * sum(t) - sum(t * x)
            lse = m_acc[...] + jnp.log(l_acc[...])
            out_ref[...] = lse * st_acc[...] - stx_acc[...]
        else:
            out_ref[...] = -stx_acc[...]


def _round_up(x, m):
    return (x + m - 1) // m * m


def _vmem_capacity_bytes():
    try:
        info = pltpu.get_tpu_info()
        for attr in ("vmem_capacity_bytes", "vmem_bytes", "vmem_size_bytes"):
            v = getattr(info, attr, None)
            if v:
                return int(v)
    except Exception:
        pass
    return 64 * 1024 * 1024   # conservative fallback (v7x per-TensorCore)


def nll_loss(output, target, *, spatial_dims=2, apply_softmax=True,
             reduction="mean", interpret=False,
             max_tile_rows=None, max_tile_cols=None):
    """Pallas implementation of landmarker NLLLoss.forward.

    `max_tile_rows` / `max_tile_cols` are testing hooks that cap the tile size
    (so the multi-block streaming paths can be exercised on small inputs).
    """
    if spatial_dims not in (2, 3):
        raise ValueError("spatial_dims must be 2 or 3")
    if reduction not in ("mean", "sum", "none"):
        raise ValueError(f"Invalid reduction: {reduction}")
    if output.ndim != 2 + spatial_dims:
        raise ValueError("expected (B, C, *spatial) inputs")

    B, C = output.shape[0], output.shape[1]
    N = B * C
    HW = 1
    for d in output.shape[2:]:
        HW *= d

    # Pure views: no padding copies, no wrapper-side dtype upcast.
    x2 = output.reshape(N, HW)
    t2 = target.reshape(N, HW)

    x_item = jnp.dtype(x2.dtype).itemsize
    t_item = jnp.dtype(t2.dtype).itemsize
    sub = {4: 8, 2: 16, 1: 32}.get(min(x_item, t_item), 8)

    # ---- VMEM budget (generation aware) ------------------------------------
    vmem_cap = _vmem_capacity_bytes()
    # Double-buffered input budget: v5e/v6e (128 MiB) -> 32 MiB, v7x (64) -> 16.
    in_budget = min(vmem_cap // 4, 32 * 1024 * 1024)
    per_col = 2 * (x_item + t_item)          # bytes per (row, col): 2 bufs/input
    vmem_limit = int(min(vmem_cap * 3 // 4, 96 * 1024 * 1024))

    # ---- rows first: keep >= 2 row blocks when possible (v7x megacore) -----
    row_cap = 512
    if max_tile_rows is not None:
        row_cap = max(sub, (max_tile_rows // sub) * sub)
    row_target = _round_up(pl.cdiv(N, 2), sub) if N >= 2 * sub else N
    tile_rows = min(row_target, row_cap)

    # ---- columns absorb the remaining budget (lane-dense, multiple of 128) -
    col_cap = max(_LANE,
                  in_budget // (per_col * max(tile_rows, sub)) // _LANE * _LANE)
    if max_tile_cols is not None:
        col_cap = min(col_cap, max(_LANE, (max_tile_cols // _LANE) * _LANE))
    if HW <= col_cap:
        tile_cols = HW        # whole spatial extent in one block -> no masking
        if row_target > tile_rows:   # leftover budget -> more rows per step
            max_rows = (in_budget
                        // (per_col * _round_up(tile_cols, _LANE)) // sub * sub)
            if max_tile_rows is not None:
                max_rows = min(max_rows, row_cap)
            tile_rows = min(row_target, max(sub, min(max_rows, 4096)))
    else:
        tile_cols = col_cap   # last (ragged) column block is masked in-kernel
    if tile_rows >= N:
        tile_rows = N         # single row block: exact extent, no row padding

    row_blocks = pl.cdiv(N, tile_rows)
    col_blocks = pl.cdiv(HW, tile_cols)
    mask_cols = (HW % tile_cols) != 0
    # TODO(synk): for N < 2*sublanes with very large HW, a column-split partial
    # pass (partial m/l/sum(t)/sum(t*x) combined in the wrapper) would let both
    # v7x TensorCores work; here the single-row-block case streams on one TC.

    kernel = functools.partial(
        _nll_kernel, hw=HW, tile_cols=tile_cols,
        apply_softmax=apply_softmax, mask_cols=mask_cols)

    out = pl.pallas_call(
        kernel,
        out_shape=jax.ShapeDtypeStruct((row_blocks * tile_rows, 1), jnp.float32),
        grid_spec=pltpu.PrefetchScalarGridSpec(
            num_scalar_prefetch=0,
            grid=(row_blocks, col_blocks),
            in_specs=[
                pl.BlockSpec((tile_rows, tile_cols), lambda i, j: (i, j)),
                pl.BlockSpec((tile_rows, tile_cols), lambda i, j: (i, j)),
            ],
            out_specs=pl.BlockSpec((tile_rows, 1), lambda i, j: (i, 0)),
            scratch_shapes=[pltpu.VMEM((tile_rows, 1), jnp.float32)] * 4,
        ),
        compiler_params=pltpu.CompilerParams(
            dimension_semantics=("parallel", "arbitrary"),
            vmem_limit_bytes=vmem_limit),
        interpret=interpret,
    )(x2, t2)

    per_bc = out[:N, 0].reshape(B, C)
    if reduction == "mean":
        return jnp.mean(per_bc)
    if reduction == "sum":
        return jnp.sum(per_bc)
    return per_bc


if __name__ == "__main__":
    key = jax.random.PRNGKey(0)
    k1, k2, k3, k4 = jax.random.split(key, 4)

    # ---- test 1: softmax path, single block, 'mean' -------------------------
    B, C, H, W = 2, 4, 16, 16
    logits = jax.random.normal(k1, (B, C, H, W), dtype=jnp.float32)
    target = jax.nn.softmax(
        jax.random.normal(k2, (B, C, H, W), dtype=jnp.float32).reshape(B, C, -1),
        axis=-1).reshape(B, C, H, W)
    loss = jax.block_until_ready(
        nll_loss(logits, target, spatial_dims=2, apply_softmax=True,
                 reduction="mean"))
    log_p = jax.nn.log_softmax(logits.reshape(B, C, -1),
                               axis=-1).reshape(B, C, H, W)
    ref = jnp.mean(jnp.sum(-target * log_p, axis=(2, 3)))
    assert jnp.allclose(loss, ref, rtol=1e-5, atol=1e-5), (loss, ref)

    # ---- test 2: forced small tiles -> multi row/col blocks, ragged tail ----
    B2, C2, H2, W2 = 4, 4, 16, 17
    logits2 = jax.random.normal(k3, (B2, C2, H2, W2), dtype=jnp.float32)
    target2 = jax.nn.softmax(
        jax.random.normal(k4, (B2, C2, H2, W2),
                          dtype=jnp.float32).reshape(B2, C2, -1),
        axis=-1).reshape(B2, C2, H2, W2)
    loss2 = jax.block_until_ready(
        nll_loss(logits2, target2, reduction="sum",
                 max_tile_rows=8, max_tile_cols=128))
    log_p2 = jax.nn.log_softmax(logits2.reshape(B2, C2, -1),
                                axis=-1).reshape(B2, C2, H2, W2)
    ref2 = jnp.sum(jnp.sum(-target2 * log_p2, axis=(2, 3)))
    assert jnp.allclose(loss2, ref2, rtol=1e-5, atol=1e-5), (loss2, ref2)

    # ---- test 3: apply_softmax=False, reduction='none', non-aligned shapes --
    B3, C3, H3, W3 = 2, 3, 12, 13
    probs = jax.nn.softmax(
        jax.random.normal(k1, (B3, C3, H3, W3),
                          dtype=jnp.float32).reshape(B3, C3, -1),
        axis=-1).reshape(B3, C3, H3, W3)
    target3 = jax.nn.softmax(
        jax.random.normal(k2, (B3, C3, H3, W3),
                          dtype=jnp.float32).reshape(B3, C3, -1),
        axis=-1).reshape(B3, C3, H3, W3)
    out3 = jax.block_until_ready(
        nll_loss(probs, target3, apply_softmax=False, reduction="none"))
    ref3 = jnp.sum(-target3 * jnp.log(probs), axis=(2, 3))
    assert out3.shape == (B3, C3)
    assert jnp.allclose(out3, ref3, rtol=1e-5, atol=1e-5), (out3, ref3)

    print("KERNEL_OK")
</pallas_src>

<mosaic_0001>
module attributes {stable_mosaic.version = 11 : i64} {
  func.func @_nll_kernel(%arg0: i32, %arg1: i32, %arg2: memref<8x256xf32, #tpu.memory_space<vmem>>, %arg3: memref<8x256xf32, #tpu.memory_space<vmem>>, %arg4: memref<8x1xf32, #tpu.memory_space<vmem>>, %arg5: memref<8x1xf32, #tpu.memory_space<vmem>>, %arg6: memref<8x1xf32, #tpu.memory_space<vmem>>, %arg7: memref<8x1xf32, #tpu.memory_space<vmem>>, %arg8: memref<8x1xf32, #tpu.memory_space<vmem>>) attributes {dimension_semantics = [#tpu.dimension_semantics<parallel>, #tpu.dimension_semantics<arbitrary>], iteration_bounds = array<i64: 1, 1>, scalar_prefetch = 0 : i64, scratch_operands = 4 : i64, tpu.core_type = #tpu.core_type<tc>, window_params = [{transform_indices = @transform_0, window_bounds = array<i64: 8, 256>}, {transform_indices = @transform_1, window_bounds = array<i64: 8, 256>}, {transform_indices = @transform_2, window_bounds = array<i64: 8, 1>}]} {
    %c0_i32 = arith.constant 0 : i32
    %0 = arith.cmpi eq, %arg1, %c0_i32 : i32
    %1 = arith.extui %0 : i1 to i32
    %c0_i32_0 = arith.constant 0 : i32
    %2 = arith.cmpi ne, %1, %c0_i32_0 : i32
    scf.if %2 {
      %cst_27 = arith.constant -1.000000e+30 : f32
      %36 = vector.broadcast %cst_27 : f32 to vector<8x1xf32>
      %c0_28 = arith.constant 0 : index
      %c0_29 = arith.constant 0 : index
      %37 = vector.load %arg5[%c0_28, %c0_29] : memref<8x1xf32, #tpu.memory_space<vmem>>, vector<8x1xf32>
      tpu.vector_store %arg5[%c0_28, %c0_29], %36 {strides = array<i32>} : memref<8x1xf32, #tpu.memory_space<vmem>>, vector<8x1xf32>,
      %cst_30 = arith.constant 0.000000e+00 : f32
      %38 = vector.broadcast %cst_30 : f32 to vector<8x1xf32>
      %c0_31 = arith.constant 0 : index
      %c0_32 = arith.constant 0 : index
      %39 = vector.load %arg6[%c0_31, %c0_32] : memref<8x1xf32, #tpu.memory_space<vmem>>, vector<8x1xf32>
      tpu.vector_store %arg6[%c0_31, %c0_32], %38 {strides = array<i32>} : memref<8x1xf32, #tpu.memory_space<vmem>>, vector<8x1xf32>,
      %cst_33 = arith.constant 0.000000e+00 : f32
      %40 = vector.broadcast %cst_33 : f32 to vector<8x1xf32>
      %c0_34 = arith.constant 0 : index
      %c0_35 = arith.constant 0 : index
      %41 = vector.load %arg7[%c0_34, %c0_35] : memref<8x1xf32, #tpu.memory_space<vmem>>, vector<8x1xf32>
      tpu.vector_store %arg7[%c0_34, %c0_35], %40 {strides = array<i32>} : memref<8x1xf32, #tpu.memory_space<vmem>>, vector<8x1xf32>,
      %cst_36 = arith.constant 0.000000e+00 : f32
      %42 = vector.broadcast %cst_36 : f32 to vector<8x1xf32>
      %c0_37 = arith.constant 0 : index
      %c0_38 = arith.constant 0 : index
      %43 = vector.load %arg8[%c0_37, %c0_38] : memref<8x1xf32, #tpu.memory_space<vmem>>, vector<8x1xf32>
      tpu.vector_store %arg8[%c0_37, %c0_38], %42 {strides = array<i32>} : memref<8x1xf32, #tpu.memory_space<vmem>>, vector<8x1xf32>,
    } else {
    }
    %c0 = arith.constant 0 : index
    %c0_1 = arith.constant 0 : index
    %3 = vector.load %arg2[%c0, %c0_1] : memref<8x256xf32, #tpu.memory_space<vmem>>, vector<8x256xf32>
    %c0_2 = arith.constant 0 : index
    %c0_3 = arith.constant 0 : index
    %4 = vector.load %arg3[%c0_2, %c0_3] : memref<8x256xf32, #tpu.memory_space<vmem>>, vector<8x256xf32>
    %cst = arith.constant dense<0xFF800000> : vector<8xf32>
    %5 = vector.multi_reduction <maximumf>, %3, %cst [1] : vector<8x256xf32> to vector<8xf32>
    %6 = vector.shape_cast %5 : vector<8xf32> to vector<8x1xf32>
    %c0_4 = arith.constant 0 : index
    %c0_5 = arith.constant 0 : index
    %7 = vector.load %arg5[%c0_4, %c0_5] : memref<8x1xf32, #tpu.memory_space<vmem>>, vector<8x1xf32>
    %8 = arith.maximumf %7, %6 : vector<8x1xf32>
    %c0_6 = arith.constant 0 : index
    %c0_7 = arith.constant 0 : index
    %9 = vector.load %arg6[%c0_6, %c0_7] : memref<8x1xf32, #tpu.memory_space<vmem>>, vector<8x1xf32>
    %c0_8 = arith.constant 0 : index
    %c0_9 = arith.constant 0 : index
    %10 = vector.load %arg5[%c0_8, %c0_9] : memref<8x1xf32, #tpu.memory_space<vmem>>, vector<8x1xf32>
    %11 = arith.subf %10, %8 : vector<8x1xf32>
    %12 = math.exp %11 : vector<8x1xf32>
    %13 = arith.mulf %9, %12 : vector<8x1xf32>
    %14 = vector.broadcast %8 : vector<8x1xf32> to vector<8x256xf32>
    %15 = arith.subf %3, %14 : vector<8x256xf32>
    %16 = math.exp %15 : vector<8x256xf32>
    %cst_10 = arith.constant dense<0.000000e+00> : vector<8xf32>
    %17 = vector.multi_reduction <add>, %16, %cst_10 [1] : vector<8x256xf32> to vector<8xf32>
    %18 = vector.shape_cast %17 : vector<8xf32> to vector<8x1xf32>
    %19 = arith.addf %13, %18 : vector<8x1xf32>
    %c0_11 = arith.constant 0 : index
    %c0_12 = arith.constant 0 : index
    %20 = vector.load %arg6[%c0_11, %c0_12] : memref<8x1xf32, #tpu.memory_space<vmem>>, vector<8x1xf32>
    tpu.vector_store %arg6[%c0_11, %c0_12], %19 {strides = array<i32>} : memref<8x1xf32, #tpu.memory_space<vmem>>, vector<8x1xf32>,
    %c0_13 = arith.constant 0 : index
    %c0_14 = arith.constant 0 : index
    %21 = vector.load %arg5[%c0_13, %c0_14] : memref<8x1xf32, #tpu.memory_space<vmem>>, vector<8x1xf32>
    tpu.vector_store %arg5[%c0_13, %c0_14], %8 {strides = array<i32>} : memref<8x1xf32, #tpu.memory_space<vmem>>, vector<8x1xf32>,
    %c0_15 = arith.constant 0 : index
    %c0_16 = arith.constant 0 : index
    %22 = vector.load %arg7[%c0_15, %c0_16] : memref<8x1xf32, #tpu.memory_space<vmem>>, vector<8x1xf32>
    %cst_17 = arith.constant dense<0.000000e+00> : vector<8xf32>
    %23 = vector.multi_reduction <add>, %4, %cst_17 [1] : vector<8x256xf32> to vector<8xf32>
    %24 = vector.shape_cast %23 : vector<8xf32> to vector<8x1xf32>
    %25 = arith.addf %22, %24 : vector<8x1xf32>
    %c0_18 = arith.constant 0 : index
    %c0_19 = arith.constant 0 : index
    %26 = vector.load %arg7[%c0_18, %c0_19] : memref<8x1xf32, #tpu.memory_space<vmem>>, vector<8x1xf32>
    tpu.vector_store %arg7[%c0_18, %c0_19], %25 {strides = array<i32>} : memref<8x1xf32, #tpu.memory_space<vmem>>, vector<8x1xf32>,
    %c0_20 = arith.constant 0 : index
    %c0_21 = arith.constant 0 : index
    %27 = vector.load %arg8[%c0_20, %c0_21] : memref<8x1xf32, #tpu.memory_space<vmem>>, vector<8x1xf32>
    %28 = arith.mulf %4, %3 : vector<8x256xf32>
    %cst_22 = arith.constant dense<0.000000e+00> : vector<8xf32>
    %29 = vector.multi_reduction <add>, %28, %cst_22 [1] : vector<8x256xf32> to vector<8xf32>
    %30 = vector.shape_cast %29 : vector<8xf32> to vector<8x1xf32>
    %31 = arith.addf %27, %30 : vector<8x1xf32>
    %c0_23 = arith.constant 0 : index
    %c0_24 = arith.constant 0 : index
    %32 = vector.load %arg8[%c0_23, %c0_24] : memref<8x1xf32, #tpu.memory_space<vmem>>, vector<8x1xf32>
    tpu.vector_store %arg8[%c0_23, %c0_24], %31 {strides = array<i32>} : memref<8x1xf32, #tpu.memory_space<vmem>>, vector<8x1xf32>,
    %c0_i32_25 = arith.constant 0 : i32
    %33 = arith.cmpi eq, %arg1, %c0_i32_25 : i32
    %34 = arith.extui %33 : i1 to i32
    %c0_i32_26 = arith.constant 0 : i32
    %35 = arith.cmpi ne, %34, %c0_i32_26 : i32
    scf.if %35 {
      %c0_27 = arith.constant 0 : index
      %c0_28 = arith.constant 0 : index
      %36 = vector.load %arg5[%c0_27, %c0_28] : memref<8x1xf32, #tpu.memory_space<vmem>>, vector<8x1xf32>
      %c0_29 = arith.constant 0 : index
      %c0_30 = arith.constant 0 : index
      %37 = vector.load %arg6[%c0_29, %c0_30] : memref<8x1xf32, #tpu.memory_space<vmem>>, vector<8x1xf32>
      %38 = math.log %37 : vector<8x1xf32>
      %39 = arith.addf %36, %38 : vector<8x1xf32>
      %c0_31 = arith.constant 0 : index
      %c0_32 = arith.constant 0 : index
      %40 = vector.load %arg7[%c0_31, %c0_32] : memref<8x1xf32, #tpu.memory_space<vmem>>, vector<8x1xf32>
      %41 = arith.mulf %39, %40 : vector<8x1xf32>
      %c0_33 = arith.constant 0 : index
      %c0_34 = arith.constant 0 : index
      %42 = vector.load %arg8[%c0_33, %c0_34] : memref<8x1xf32, #tpu.memory_space<vmem>>, vector<8x1xf32>
      %43 = arith.subf %41, %42 : vector<8x1xf32>
      %c0_35 = arith.constant 0 : index
      %c0_36 = arith.constant 0 : index
      %44 = vector.load %arg4[%c0_35, %c0_36] : memref<8x1xf32, #tpu.memory_space<vmem>>, vector<8x1xf32>
      tpu.vector_store %arg4[%c0_35, %c0_36], %43 {strides = array<i32>} : memref<8x1xf32, #tpu.memory_space<vmem>>, vector<8x1xf32>,
    } else {
    }
    return
  }
  func.func @transform_0(%arg0: i32, %arg1: i32) -> (i32, i32) {
    %c0_i32 = arith.constant 0 : i32
    return %arg0, %arg1 : i32, i32
  }
  func.func @transform_1(%arg0: i32, %arg1: i32) -> (i32, i32) {
    %c0_i32 = arith.constant 0 : i32
    return %arg0, %arg1 : i32, i32
  }
  func.func @transform_2(%arg0: i32, %arg1: i32) -> (i32, i32) {
    %c0_i32 = arith.constant 0 : i32
    %c0_i32_0 = arith.constant 0 : i32
    return %arg0, %c0_i32 : i32, i32
  }
}

</mosaic_0001>

<bundles_post_ra>
// kernel: tpu_custom_call.1
= control target key start
LH: loop header
LB: loop body
LE: loop exit
PB: predicated region body
PF: predicated region fallthrough
CT: control target
= control target key end

     0   :  { %7 = vsyncpa [#allocation7], 0  ;;  %s227_s0 = inlined_call_operand.hbm [shape: f32[8,256], index: 0, kind: input, shape index: {}]   ;;  %s228_s1 = inlined_call_operand.hbm [shape: f32[8,256], index: 1, kind: input, shape index: {}]   ;;  %s229_s2 = inlined_call_operand.vmem [shape: f32[8,1], index: 2, kind: output, shape index: {}]  }
   0x1   :  { %8 = vsyncpa [#allocation9], 0  ;;  %s171_s9 = smov [#allocation6]   ;;  %s172_s11 = smov [#allocation8]  }
   0x2   :  { %s15_s10 = sshll.u32 %s171_s9, 4  ;;  %s25_s12 = sshll.u32 %s172_s11, 4  ;;  %s16_s10 = int_to_ptr.vmem [resolvable:$true] %s15_s10  ;;  %s26_s12 = int_to_ptr.vmem [resolvable:$true] %s25_s12 }
   0x3   :  { %s123_s15 = scalar_lea.hbm %s227_s0, 256 }
   0x4   :  { %p124_p0 = scmp.ne.s32.totalorder %s227_s0, %s123_s15  ;;  %p127_p1 = scmp.lt.u32.totalorder %s123_s15, %s227_s0 }
   0x6   :  { %p129_p2 = pnand %p127_p1, %p124_p0 }
   0x8   :  { %132 = shalt.err (!%p129_p2)
}
   0x9   :  { %s133_s20 = scalar_lea.vmem %s16_s10, 256  ;;  %p138_p4 = scmp.lt.s32.totalorder %s16_s10, %s16_s10 }
   0xa   :  { %p134_p3 = scmp.ne.s32.totalorder %s16_s10, %s133_s20  ;;  %p139_p5 = scmp.lt.s32.totalorder %s133_s20, %s133_s20 }
   0xc   :  { %p140_p6 = por %p139_p5, %p138_p4 }
   0xe   :  { %p141_p7 = pnand %p140_p6, %p134_p3 }
  0x10   :  { %144 = shalt.err (!%p141_p7)
}
  0x11   :  { %18 = dma.hbm_to_vmem [thread:$0]  %s227_s0, 256, %s16_s10, [#allocation7]  }
  0x12   :  { %s145_s25 = scalar_lea.hbm %s228_s1, 256 }
  0x13   :  { %p146_p8 = scmp.ne.s32.totalorder %s228_s1, %s145_s25  ;;  %p149_p9 = scmp.lt.u32.totalorder %s145_s25, %s228_s1 }
  0x15   :  { %p151_p10 = pnand %p149_p9, %p146_p8 }
  0x17   :  { %154 = shalt.err (!%p151_p10)
}
  0x18   :  { %s155_s30 = scalar_lea.vmem %s26_s12, 256  ;;  %p160_p12 = scmp.lt.s32.totalorder %s26_s12, %s26_s12 }
  0x19   :  { %p156_p11 = scmp.ne.s32.totalorder %s26_s12, %s155_s30  ;;  %p161_p13 = scmp.lt.s32.totalorder %s155_s30, %s155_s30 }
  0x1b   :  { %p162_p0 = por %p161_p13, %p160_p12 }
  0x1d   :  { %p163_p1 = pnand %p162_p0, %p156_p11 }
  0x1f   :  { %166 = shalt.err (!%p163_p1)
}
  0x20   :  { %28 = dma.hbm_to_vmem [thread:$0]  %s228_s1, 256, %s26_s12, [#allocation9]  }
  0x21   :  { %167 = dma.done.wait [#allocation7], 256  }
  0x22   :  { %168 = vsyncadd [#allocation7], 4294967040 }
  0x23   :  { %169 = dma.done.wait [#allocation9], 256  }
  0x24   :  { %170 = vsyncadd [#allocation9], 4294967040  ;;  %vm39_vm0 = vcmask 7168   ;;  %v173_v0 = vmov -1e+30   ;;  %v44_v1 = vld [vmem:[#allocation6] sm:$0xff] }
  0x25   :  { %40 = vst.msk [vmem:[#allocation2] sm:$0xff] %vm39_vm0, %v173_v0  ;;  %v45_v2 = vld [vmem:[#allocation6 + $0x8] sm:$0xff]  ;;  %v174_v4 = vmov 0   ;;  %v175_v5 = vmov 0.0   ;;  %v46_v17 = vld [vmem:[#allocation8] sm:$0xff]  ;;  %v47_v18 = vld [vmem:[#allocation8 + $0x8] sm:$0xff] }
  0x26   :  { %v48_v3 = vmax.f32 %v44_v1, %v45_v2  ;;  %114 = vset.pattern.permute.xlu0 %v174_v4  ;;  %41 = vst.msk [vmem:[#allocation3] sm:$0xff] %vm39_vm0, %v175_v5  ;;  %42 = vst.msk [vmem:[#allocation4] sm:$0xff] %vm39_vm0, %v175_v5  ;;  %v77_v20 = vadd.f32 %v47_v18, %v46_v17  ;;  %v83_v21 = vmul.f32 %v46_v17, %v44_v1 }
  0x27   :  { %43 = vst.msk [vmem:[#allocation5] sm:$0xff] %vm39_vm0, %v175_v5  ;;  %v84_v22 = vmul.f32 %v47_v18, %v45_v2 }
  0x28   :  { %49 = vmax.xlane.f32.xlu0 %v48_v3 }
  0x29   :  { %v85_v23 = vadd.f32 %v84_v22, %v83_v21 }
  0x2c   :  { %v51_v6 = vld [vmem:[#allocation2] sm:$0xff] }
  0x2d   :  { %v53_v26 = vld [vmem:[#allocation3] sm:$0xff]  ;;  %v76_v30 = vld [vmem:[#allocation4] sm:$0xff] }
  0x2e   :  { %v82_v33 = vld [vmem:[#allocation5] sm:$0xff] }
  0xb5   :  { %v50_v7 = vpop.xlane.xlu0 %49 }
  0xb6   :  { %v52_v8 = vmax.f32 %v51_v6, %v50_v7 }
  0xb8   :  { %v54_v9 = vsub.f32 %v51_v6, %v52_v8  ;;  %75 = vst.msk [vmem:[#allocation2] sm:$0xff] %vm39_vm0, %v52_v8  ;;  %60 = vperm.xlu0 %114, %v52_v8  }
  0xba   :  { %v55_v24 = vmul.f32 1.442695, %v54_v9 }
  0xbf   :  { %v93_v39 = vld [vmem:[#allocation2] sm:$0xff] }
 0x137   :  { %v61_v10 = vpop.permute.xlu0 %60 }
 0x138   :  { %v63_v11 = vsub.f32 %v44_v1, %v61_v10  ;;  %v64_v12 = vsub.f32 %v45_v2, %v61_v10 }
 0x13a   :  { %v65_v13 = vmul.f32 1.442695, %v63_v11  ;;  %v67_v14 = vmul.f32 1.442695, %v64_v12 }
 0x13c   :  { %115 = vpow2.f32 %v65_v13 }
 0x13d   :  { %117 = vpow2.f32 %v67_v14 }
 0x13e   :  { %119 = vpow2.f32 %v55_v24 }
 0x146   :  { %v116_v15 = vpop.eup %115 }
 0x147   :  { %v118_v16 = vpop.eup %117 }
 0x148   :  { %v69_v19 = vadd.f32 %v118_v16, %v116_v15  ;;  %v120_v25 = vpop.eup %119 }
 0x149   :  { %v57_v27 = vmul.f32 %v120_v25, %v53_v26 }
 0x14a   :  { %70 = vadd.xlane.f32.xlu1 %v69_v19 }
 0x14e   :  { %78 = vadd.xlane.f32.xlu1 %v77_v20 }
 0x152   :  { %86 = vadd.xlane.f32.xlu1 %v85_v23 }
 0x1d7   :  { %v71_v28 = vpop.xlane.xlu1 %70 }
 0x1d8   :  { %v72_v29 = vadd.f32 %v71_v28, %v57_v27 }
 0x1da   :  { %74 = vst.msk [vmem:[#allocation3] sm:$0xff] %vm39_vm0, %v72_v29 }
 0x1db   :  { %v79_v31 = vpop.xlane.xlu1 %78 }
 0x1dc   :  { %v80_v32 = vadd.f32 %v79_v31, %v76_v30 }
 0x1de   :  { %81 = vst.msk [vmem:[#allocation4] sm:$0xff] %vm39_vm0, %v80_v32 }
 0x1df   :  { %v87_v34 = vpop.xlane.xlu1 %86 }
 0x1e0   :  { %v88_v35 = vadd.f32 %v87_v34, %v82_v33 }
 0x1e1   :  { %v94_v36 = vld [vmem:[#allocation3] sm:$0xff] }
 0x1e2   :  { %121 = vlog2.f32 %v94_v36  ;;  %89 = vst.msk [vmem:[#allocation5] sm:$0xff] %vm39_vm0, %v88_v35 }
 0x1e5   :  { %v98_v41 = vld [vmem:[#allocation4] sm:$0xff] }
 0x1e9   :  { %v100_v42 = vld [vmem:[#allocation5] sm:$0xff] }
 0x1ec   :  { %v122_v37 = vpop.eup %121 }
 0x1ed   :  { %v96_v38 = vmul.f32 0.6931472, %v122_v37 }
 0x1ef   :  { %v97_v40 = vadd.f32 %v96_v38, %v93_v39 }
 0x1f1   :  { %v99_v43 = vmul.f32 %v98_v41, %v97_v40 }
 0x1f3   :  { %v101_v44 = vsub.f32 %v99_v43, %v100_v42 }
 0x1f5   :  { %102 = vst.msk [vmem:[%s229_s2] sm:$0xff] %vm39_vm0, %v101_v44 }
 0x1f6   :  { %107 = vsyncpa [#allocation7], 1 }
 0x1f7   :  { %108 = vsyncpa [#allocation9], 1 }

</bundles_post_ra>
